<compile_context>
chip_gen: v7x
topology: tpu7x:2x2x1
jax: 0.10.0
libtpu: 0.0.40
codegen_flags: <defaults>
</compile_context>

<pallas_src>
import jax
import jax.numpy as jnp
from jax.experimental import pallas as pl
from jax.experimental.pallas import tpu as pltpu

_EPS = 1e-5


# ---------------------------------------------------------------------------
# helpers
# ---------------------------------------------------------------------------
def _round_up(a, m):
    return ((a + m - 1) // m) * m


def _cdiv(a, b):
    return -(-a // b)


def _pack_factor(d):
    # How many d-wide rows fit in one 128-lane vreg row (lane-dense packing).
    return 128 // d if (d < 128 and 128 % d == 0) else 1


def _pack_and_pad(x2d, pack, block_rows):
    """Pad rows and fold `pack` consecutive rows into the lane axis.

    The row tile tm is sized adaptively so padding waste is bounded by at most
    7 packed rows (instead of up to block_rows-1 with a fixed tile).
    """
    n, d = x2d.shape
    n_pk = _cdiv(n, pack)
    n_tiles = max(1, _cdiv(n_pk, block_rows))
    tm = _round_up(_cdiv(n_pk, n_tiles), 8)
    n_pk_pad = n_tiles * tm
    pad = n_pk_pad * pack - n
    if pad:
        x2d = jnp.pad(x2d, ((0, pad), (0, 0)))        # zero rows: LN-safe
    return x2d.reshape(n_pk_pad, pack * d), n_pk_pad, tm


def _pick_out_tile(d_out):
    """Output-dim tile for the wide path (keeps weight/out tiles VMEM-sized)."""
    if d_out <= 1024:
        return d_out
    for t in (1024, 512, 256, 128):
        if d_out % t == 0:
            return t
    return d_out


# ---------------------------------------------------------------------------
# kernels — lane-packed path (dim < 128, 128 % dim == 0)
# ---------------------------------------------------------------------------
def _ln_linear_packed_kernel(x_ref, mavg_ref, w_ref, wb_ref, o_ref):
    """Fused LayerNorm (per d-wide lane segment) + Linear on a packed row tile.

    x_ref:    (TM, pack*d)         `pack` original rows per packed row
    mavg_ref: (pack*d, pack*d)     block-diag averaging matrix (1/d blocks)
    w_ref:    (pack*d, pack*dout)  bf16 block-diag weight = kron(I, gamma*W)
    wb_ref:   (1, pack*dout)       folded bias = tile(beta@W + fn_b)
    """
    x = x_ref[...].astype(jnp.float32)
    mavg = mavg_ref[...]
    # DEFAULT-precision stats matmuls: one bf16 MXU pass each; mavg entries
    # are exact powers of two so only x's bf16 truncation contributes error.
    mean = jnp.dot(x, mavg, preferred_element_type=jnp.float32)
    c = x - mean                                        # two-pass (centered) var
    var = jnp.dot(c * c, mavg, preferred_element_type=jnp.float32)
    xn = (c * jax.lax.rsqrt(var + _EPS)).astype(jnp.bfloat16)
    # bf16 operands, f32 accumulate: single MXU pass; LN affine already folded
    # into w_ref / wb_ref on the host.
    y = jnp.dot(xn, w_ref[...], preferred_element_type=jnp.float32) + wb_ref[...]
    o_ref[...] = y.astype(o_ref.dtype)


def _ln_packed_kernel(x_ref, g_ref, b_ref, mavg_ref, o_ref):
    """Packed LayerNorm only (context branch)."""
    x = x_ref[...].astype(jnp.float32)
    mavg = mavg_ref[...]
    mean = jnp.dot(x, mavg, preferred_element_type=jnp.float32)
    c = x - mean
    var = jnp.dot(c * c, mavg, preferred_element_type=jnp.float32)
    xn = c * jax.lax.rsqrt(var + _EPS)
    o_ref[...] = (xn * g_ref[...] + b_ref[...]).astype(o_ref.dtype)


# ---------------------------------------------------------------------------
# kernels — wide path (dim >= 128: already lane-dense, pack == 1)
# ---------------------------------------------------------------------------
def _ln_linear_wide_kernel(x_ref, w_ref, wb_ref, o_ref, xn_ref):
    """LN + Linear with the output dimension tiled over grid axis 1.

    xn (bf16, LN affine folded into the weight) is computed once per row tile
    under j == 0 and reused for every output tile j.
    """
    @pl.when(pl.program_id(1) == 0)
    def _():
        x = x_ref[...].astype(jnp.float32)
        d = x.shape[-1]
        mean = jnp.sum(x, axis=-1, keepdims=True) * (1.0 / d)
        c = x - mean
        var = jnp.sum(c * c, axis=-1, keepdims=True) * (1.0 / d)
        xn_ref[...] = (c * jax.lax.rsqrt(var + _EPS)).astype(xn_ref.dtype)

    y = jnp.dot(xn_ref[...], w_ref[...],
                preferred_element_type=jnp.float32) + wb_ref[...]
    o_ref[...] = y.astype(o_ref.dtype)


def _ln_wide_kernel(x_ref, g_ref, b_ref, o_ref):
    x = x_ref[...].astype(jnp.float32)
    d = x.shape[-1]
    mean = jnp.sum(x, axis=-1, keepdims=True) * (1.0 / d)
    c = x - mean
    var = jnp.sum(c * c, axis=-1, keepdims=True) * (1.0 / d)
    xn = c * jax.lax.rsqrt(var + _EPS)
    o_ref[...] = (xn * g_ref[...] + b_ref[...]).astype(o_ref.dtype)


# ---------------------------------------------------------------------------
# wrappers
# ---------------------------------------------------------------------------
def layernorm_linear(x2d, gamma, beta, w, wb, *, block_rows=1024):
    """LayerNorm(dim) fused with fn = Linear(dim, d_out), row-tiled & pipelined."""
    n, d = x2d.shape
    d_out = w.shape[1]
    pack = _pack_factor(d)

    # Fold the LN affine into the Linear (done once at trace time):
    #   (xn*gamma + beta) @ W + b  ==  xn @ (diag(gamma) W) + (beta @ W + b)
    w_f = gamma.astype(jnp.float32)[:, None] * w.astype(jnp.float32)
    b_f = beta.astype(jnp.float32) @ w.astype(jnp.float32) + wb.astype(jnp.float32)

    # TODO(synk): if the surrounding model tolerates bf16 activations, take x /
    # emit y in bf16 (halves steady-state HBM traffic); kept f32 to match the
    # PyTorch module's dtype.

    if pack > 1:
        xp, n_pk_pad, tm = _pack_and_pad(x2d, pack, block_rows)
        wi, wo = pack * d, pack * d_out
        eye = jnp.eye(pack, dtype=jnp.float32)
        mavg = jnp.kron(eye, jnp.full((d, d), 1.0 / d, dtype=jnp.float32))
        w_p = jnp.kron(eye, w_f).astype(jnp.bfloat16)        # block-diag Linear
        wb_p = jnp.tile(b_f.reshape(1, d_out), (1, pack))

        yp = pl.pallas_call(
            _ln_linear_packed_kernel,
            out_shape=jax.ShapeDtypeStruct((n_pk_pad, wo), x2d.dtype),
            grid=(n_pk_pad // tm,),
            in_specs=[
                pl.BlockSpec((tm, wi), lambda i: (i, 0)),     # tiled rows
                pl.BlockSpec((wi, wi), lambda i: (0, 0)),     # resident mavg
                pl.BlockSpec((wi, wo), lambda i: (0, 0)),     # resident weight
                pl.BlockSpec((1, wo), lambda i: (0, 0)),      # resident bias
            ],
            out_specs=pl.BlockSpec((tm, wo), lambda i: (i, 0)),
            compiler_params=pltpu.CompilerParams(
                # TODO(synk): on v7x verify both TCs are used; switch to
                # CORE_PARALLEL / pl.core_map if the profile shows one idle TC.
                dimension_semantics=("parallel",)),
        )(xp, mavg, w_p, wb_p)
        return yp.reshape(n_pk_pad * pack, d_out)[:n]

    # --- wide path (pack == 1): tile rows AND the output dimension ---------
    tm_cap = max(8, ((2 * 1024 * 1024) // (d * 4)) // 8 * 8)  # ~2 MiB x tile
    xp, n_pad, tm = _pack_and_pad(x2d, 1, min(block_rows, tm_cap))
    tn = _pick_out_tile(d_out)
    n_j = d_out // tn
    w_b = w_f.astype(jnp.bfloat16)          # bf16 operands on every generation
    wb_b = b_f.reshape(1, d_out)

    yp = pl.pallas_call(
        _ln_linear_wide_kernel,
        out_shape=jax.ShapeDtypeStruct((n_pad, d_out), x2d.dtype),
        grid=(n_pad // tm, n_j),
        in_specs=[
            pl.BlockSpec((tm, d), lambda i, j: (i, 0)),       # x: constant over j
            pl.BlockSpec((d, tn), lambda i, j: (0, j)),       # weight N-tile
            pl.BlockSpec((1, tn), lambda i, j: (0, j)),       # bias N-tile
        ],
        out_specs=pl.BlockSpec((tm, tn), lambda i, j: (i, j)),
        scratch_shapes=[pltpu.VMEM((tm, d), jnp.bfloat16)],   # xn reused over j
        compiler_params=pltpu.CompilerParams(
            dimension_semantics=("parallel", "arbitrary")),
    )(xp, w_b, wb_b)
    return yp[:n]


def layernorm(x2d, gamma, beta, *, block_rows=1024):
    """Plain LayerNorm over the last dim (context branch), row-tiled & pipelined."""
    n, d = x2d.shape
    pack = _pack_factor(d)

    if pack > 1:
        xp, n_pk_pad, tm = _pack_and_pad(x2d, pack, block_rows)
        wi = pack * d
        g_p = jnp.tile(gamma.astype(jnp.float32).reshape(1, d), (1, pack))
        b_p = jnp.tile(beta.astype(jnp.float32).reshape(1, d), (1, pack))
        mavg = jnp.kron(jnp.eye(pack, dtype=jnp.float32),
                        jnp.full((d, d), 1.0 / d, dtype=jnp.float32))

        yp = pl.pallas_call(
            _ln_packed_kernel,
            out_shape=jax.ShapeDtypeStruct((n_pk_pad, wi), x2d.dtype),
            grid=(n_pk_pad // tm,),
            in_specs=[
                pl.BlockSpec((tm, wi), lambda i: (i, 0)),
                pl.BlockSpec((1, wi), lambda i: (0, 0)),
                pl.BlockSpec((1, wi), lambda i: (0, 0)),
                pl.BlockSpec((wi, wi), lambda i: (0, 0)),
            ],
            out_specs=pl.BlockSpec((tm, wi), lambda i: (i, 0)),
            compiler_params=pltpu.CompilerParams(
                dimension_semantics=("parallel",)),
        )(xp, g_p, b_p, mavg)
        return yp.reshape(n_pk_pad * pack, d)[:n]

    # --- wide path -----------------------------------------------------------
    tm_cap = max(8, ((2 * 1024 * 1024) // (d * 4)) // 8 * 8)
    xp, n_pad, tm = _pack_and_pad(x2d, 1, min(block_rows, tm_cap))
    g_p = gamma.astype(jnp.float32).reshape(1, d)
    b_p = beta.astype(jnp.float32).reshape(1, d)

    yp = pl.pallas_call(
        _ln_wide_kernel,
        out_shape=jax.ShapeDtypeStruct((n_pad, d), x2d.dtype),
        grid=(n_pad // tm,),
        in_specs=[
            pl.BlockSpec((tm, d), lambda i: (i, 0)),
            pl.BlockSpec((1, d), lambda i: (0, 0)),
            pl.BlockSpec((1, d), lambda i: (0, 0)),
        ],
        out_specs=pl.BlockSpec((tm, d), lambda i: (i, 0)),
        compiler_params=pltpu.CompilerParams(
            dimension_semantics=("parallel",)),
    )(xp, g_p, b_p)
    return yp[:n]


def pre_norm_forward(params, x, context=None):
    """PreNorm.forward: norm x, optionally norm context, call fn(x, context=...)."""
    b, s, d = x.shape
    x2d = x.reshape(b * s, d)
    # fn = Linear(dim, dim), fused with the x LayerNorm in one Pallas kernel.
    y2d = layernorm_linear(x2d, params["ln_g"], params["ln_b"],
                           params["fn_w"], params["fn_b"])
    y = y2d.reshape(b, s, d)

    normed_ctx = None
    if context is not None:
        bc, sc, dc = context.shape
        c2d = context.reshape(bc * sc, dc)
        normed_ctx = layernorm(c2d, params["lnc_g"], params["lnc_b"]).reshape(bc, sc, dc)
        # TODO(synk): the wrapped fn here does not consume the normed context;
        # it is returned so a downstream fn (e.g. cross-attention) could use it.
    return y, normed_ctx


def init_params(key, dim, context_dim):
    ks = jax.random.split(key, 6)
    return {
        # LayerNorm(dim) affine params (non-trivial values to exercise the path)
        "ln_g": 1.0 + 0.1 * jax.random.normal(ks[0], (dim,), jnp.float32),
        "ln_b": 0.1 * jax.random.normal(ks[1], (dim,), jnp.float32),
        # LayerNorm(context_dim)
        "lnc_g": 1.0 + 0.1 * jax.random.normal(ks[2], (context_dim,), jnp.float32),
        "lnc_b": 0.1 * jax.random.normal(ks[3], (context_dim,), jnp.float32),
        # fn = Linear(dim, dim), deterministic synthetic weights
        "fn_w": 0.02 * jax.random.normal(ks[4], (dim, dim), jnp.float32),
        "fn_b": 0.02 * jax.random.normal(ks[5], (dim,), jnp.float32),
    }


if __name__ == "__main__":
    dim, context_dim = 32, 16
    batch, seq, seq_ctx = 2, 8, 8

    key = jax.random.PRNGKey(0)
    kx, kc, kp = jax.random.split(key, 3)
    x = jax.random.normal(kx, (batch, seq, dim), jnp.float32)
    context = jax.random.normal(kc, (batch, seq_ctx, context_dim), jnp.float32)
    params = init_params(kp, dim, context_dim)

    fwd = jax.jit(pre_norm_forward)
    y, normed_ctx = fwd(params, x, context)
    jax.block_until_ready((y, normed_ctx))

    # sanity check against a plain JAX (f32) reference
    def ln_ref(v, g, b, eps=1e-5):
        m = v.mean(-1, keepdims=True)
        va = ((v - m) ** 2).mean(-1, keepdims=True)
        return (v - m) / jnp.sqrt(va + eps) * g + b

    y_ref = jnp.dot(ln_ref(x, params["ln_g"], params["ln_b"]), params["fn_w"],
                    precision=jax.lax.Precision.HIGHEST) + params["fn_b"]
    c_ref = ln_ref(context, params["lnc_g"], params["lnc_b"])

    assert y.shape == (batch, seq, dim)
    assert normed_ctx.shape == (batch, seq_ctx, context_dim)
    # Tolerances sized for the intentional precision demotions (one-pass bf16
    # MXU statistics + bf16 Linear operands with f32 accumulation).
    assert jnp.allclose(y, y_ref, atol=1e-2, rtol=1e-2)
    assert jnp.allclose(normed_ctx, c_ref, atol=2e-2, rtol=2e-2)

    print("KERNEL_OK")
</pallas_src>

<mosaic_0001>
module attributes {stable_mosaic.version = 11 : i64} {
  func.func @_ln_linear_packed_kernel(%arg0: i32, %arg1: memref<8x128xf32, #tpu.memory_space<vmem>>, %arg2: memref<128x128xf32, #tpu.memory_space<vmem>>, %arg3: memref<128x128xbf16, #tpu.memory_space<vmem>>, %arg4: memref<1x128xf32, #tpu.memory_space<vmem>>, %arg5: memref<8x128xf32, #tpu.memory_space<vmem>>) attributes {dimension_semantics = [#tpu.dimension_semantics<parallel>], iteration_bounds = array<i64: 1>, scalar_prefetch = 0 : i64, scratch_operands = 0 : i64, tpu.core_type = #tpu.core_type<tc>, window_params = [{transform_indices = @transform_0, window_bounds = array<i64: 8, 128>}, {pipeline_mode = #tpu.pipeline_mode<synchronous>, transform_indices = @transform_1, window_bounds = array<i64: 128, 128>}, {pipeline_mode = #tpu.pipeline_mode<synchronous>, transform_indices = @transform_2, window_bounds = array<i64: 128, 128>}, {pipeline_mode = #tpu.pipeline_mode<synchronous>, transform_indices = @transform_3, window_bounds = array<i64: 1, 128>}, {transform_indices = @transform_4, window_bounds = array<i64: 8, 128>}]} {
    %c0 = arith.constant 0 : index
    %c0_0 = arith.constant 0 : index
    %0 = vector.load %arg1[%c0, %c0_0] : memref<8x128xf32, #tpu.memory_space<vmem>>, vector<8x128xf32>
    %c0_1 = arith.constant 0 : index
    %c0_2 = arith.constant 0 : index
    %1 = vector.load %arg2[%c0_1, %c0_2] : memref<128x128xf32, #tpu.memory_space<vmem>>, vector<128x128xf32>
    %cst = arith.constant dense<0.000000e+00> : vector<8x128xf32>
    %2 = tpu.matmul %0, %1, %cst {dimension_numbers = #tpu.dot_dimension_numbers<[1], [0], [0], [1], [0, 0, 1, 1], [], []>} : vector<8x128xf32>, vector<128x128xf32>, vector<8x128xf32> -> vector<8x128xf32>
    %3 = arith.subf %0, %2 : vector<8x128xf32>
    %4 = arith.mulf %3, %3 : vector<8x128xf32>
    %cst_3 = arith.constant dense<0.000000e+00> : vector<8x128xf32>
    %5 = tpu.matmul %4, %1, %cst_3 {dimension_numbers = #tpu.dot_dimension_numbers<[1], [0], [0], [1], [0, 0, 1, 1], [], []>} : vector<8x128xf32>, vector<128x128xf32>, vector<8x128xf32> -> vector<8x128xf32>
    %cst_4 = arith.constant 9.99999974E-6 : f32
    %6 = vector.broadcast %cst_4 : f32 to vector<8x128xf32>
    %7 = arith.addf %5, %6 : vector<8x128xf32>
    %8 = math.rsqrt %7 : vector<8x128xf32>
    %9 = arith.mulf %3, %8 : vector<8x128xf32>
    %10 = arith.truncf %9 : vector<8x128xf32> to vector<8x128xbf16>
    %c0_5 = arith.constant 0 : index
    %c0_6 = arith.constant 0 : index
    %11 = vector.load %arg3[%c0_5, %c0_6] : memref<128x128xbf16, #tpu.memory_space<vmem>>, vector<128x128xbf16>
    %cst_7 = arith.constant dense<0.000000e+00> : vector<8x128xf32>
    %12 = tpu.matmul %10, %11, %cst_7 {dimension_numbers = #tpu.dot_dimension_numbers<[1], [0], [0], [1], [0, 0, 1, 1], [], []>} : vector<8x128xbf16>, vector<128x128xbf16>, vector<8x128xf32> -> vector<8x128xf32>
    %c0_8 = arith.constant 0 : index
    %c0_9 = arith.constant 0 : index
    %13 = vector.load %arg4[%c0_8, %c0_9] : memref<1x128xf32, #tpu.memory_space<vmem>>, vector<1x128xf32>
    %14 = vector.broadcast %13 : vector<1x128xf32> to vector<8x128xf32>
    %15 = arith.addf %12, %14 : vector<8x128xf32>
    %c0_10 = arith.constant 0 : index
    %c0_11 = arith.constant 0 : index
    %16 = vector.load %arg5[%c0_10, %c0_11] : memref<8x128xf32, #tpu.memory_space<vmem>>, vector<8x128xf32>
    tpu.vector_store %arg5[%c0_10, %c0_11], %15 {strides = array<i32>} : memref<8x128xf32, #tpu.memory_space<vmem>>, vector<8x128xf32>,
    return
  }
  func.func @transform_0(%arg0: i32) -> (i32, i32) {
    %c0_i32 = arith.constant 0 : i32
    %c0_i32_0 = arith.constant 0 : i32
    return %arg0, %c0_i32 : i32, i32
  }
  func.func @transform_1(%arg0: i32) -> (i32, i32) {
    %c0_i32 = arith.constant 0 : i32
    %c0_i32_0 = arith.constant 0 : i32
    %c0_i32_1 = arith.constant 0 : i32
    return %c0_i32, %c0_i32_0 : i32, i32
  }
  func.func @transform_2(%arg0: i32) -> (i32, i32) {
    %c0_i32 = arith.constant 0 : i32
    %c0_i32_0 = arith.constant 0 : i32
    %c0_i32_1 = arith.constant 0 : i32
    return %c0_i32, %c0_i32_0 : i32, i32
  }
  func.func @transform_3(%arg0: i32) -> (i32, i32) {
    %c0_i32 = arith.constant 0 : i32
    %c0_i32_0 = arith.constant 0 : i32
    %c0_i32_1 = arith.constant 0 : i32
    return %c0_i32, %c0_i32_0 : i32, i32
  }
  func.func @transform_4(%arg0: i32) -> (i32, i32) {
    %c0_i32 = arith.constant 0 : i32
    %c0_i32_0 = arith.constant 0 : i32
    return %arg0, %c0_i32 : i32, i32
  }
}

module attributes {stable_mosaic.version = 11 : i64} {
  func.func @_ln_packed_kernel(%arg0: i32, %arg1: memref<8x128xf32, #tpu.memory_space<vmem>>, %arg2: memref<1x128xf32, #tpu.memory_space<vmem>>, %arg3: memref<1x128xf32, #tpu.memory_space<vmem>>, %arg4: memref<128x128xf32, #tpu.memory_space<vmem>>, %arg5: memref<8x128xf32, #tpu.memory_space<vmem>>) attributes {dimension_semantics = [#tpu.dimension_semantics<parallel>], iteration_bounds = array<i64: 1>, scalar_prefetch = 0 : i64, scratch_operands = 0 : i64, tpu.core_type = #tpu.core_type<tc>, window_params = [{transform_indices = @transform_0, window_bounds = array<i64: 8, 128>}, {pipeline_mode = #tpu.pipeline_mode<synchronous>, transform_indices = @transform_1, window_bounds = array<i64: 1, 128>}, {pipeline_mode = #tpu.pipeline_mode<synchronous>, transform_indices = @transform_2, window_bounds = array<i64: 1, 128>}, {pipeline_mode = #tpu.pipeline_mode<synchronous>, transform_indices = @transform_3, window_bounds = array<i64: 128, 128>}, {transform_indices = @transform_4, window_bounds = array<i64: 8, 128>}]} {
    %c0 = arith.constant 0 : index
    %c0_0 = arith.constant 0 : index
    %0 = vector.load %arg1[%c0, %c0_0] : memref<8x128xf32, #tpu.memory_space<vmem>>, vector<8x128xf32>
    %c0_1 = arith.constant 0 : index
    %c0_2 = arith.constant 0 : index
    %1 = vector.load %arg4[%c0_1, %c0_2] : memref<128x128xf32, #tpu.memory_space<vmem>>, vector<128x128xf32>
    %cst = arith.constant dense<0.000000e+00> : vector<8x128xf32>
    %2 = tpu.matmul %0, %1, %cst {dimension_numbers = #tpu.dot_dimension_numbers<[1], [0], [0], [1], [0, 0, 1, 1], [], []>} : vector<8x128xf32>, vector<128x128xf32>, vector<8x128xf32> -> vector<8x128xf32>
    %3 = arith.subf %0, %2 : vector<8x128xf32>
    %4 = arith.mulf %3, %3 : vector<8x128xf32>
    %cst_3 = arith.constant dense<0.000000e+00> : vector<8x128xf32>
    %5 = tpu.matmul %4, %1, %cst_3 {dimension_numbers = #tpu.dot_dimension_numbers<[1], [0], [0], [1], [0, 0, 1, 1], [], []>} : vector<8x128xf32>, vector<128x128xf32>, vector<8x128xf32> -> vector<8x128xf32>
    %cst_4 = arith.constant 9.99999974E-6 : f32
    %6 = vector.broadcast %cst_4 : f32 to vector<8x128xf32>
    %7 = arith.addf %5, %6 : vector<8x128xf32>
    %8 = math.rsqrt %7 : vector<8x128xf32>
    %9 = arith.mulf %3, %8 : vector<8x128xf32>
    %c0_5 = arith.constant 0 : index
    %c0_6 = arith.constant 0 : index
    %10 = vector.load %arg2[%c0_5, %c0_6] : memref<1x128xf32, #tpu.memory_space<vmem>>, vector<1x128xf32>
    %11 = vector.broadcast %10 : vector<1x128xf32> to vector<8x128xf32>
    %12 = arith.mulf %9, %11 : vector<8x128xf32>
    %c0_7 = arith.constant 0 : index
    %c0_8 = arith.constant 0 : index
    %13 = vector.load %arg3[%c0_7, %c0_8] : memref<1x128xf32, #tpu.memory_space<vmem>>, vector<1x128xf32>
    %14 = vector.broadcast %13 : vector<1x128xf32> to vector<8x128xf32>
    %15 = arith.addf %12, %14 : vector<8x128xf32>
    %c0_9 = arith.constant 0 : index
    %c0_10 = arith.constant 0 : index
    %16 = vector.load %arg5[%c0_9, %c0_10] : memref<8x128xf32, #tpu.memory_space<vmem>>, vector<8x128xf32>
    tpu.vector_store %arg5[%c0_9, %c0_10], %15 {strides = array<i32>} : memref<8x128xf32, #tpu.memory_space<vmem>>, vector<8x128xf32>,
    return
  }
  func.func @transform_0(%arg0: i32) -> (i32, i32) {
    %c0_i32 = arith.constant 0 : i32
    %c0_i32_0 = arith.constant 0 : i32
    return %arg0, %c0_i32 : i32, i32
  }
  func.func @transform_1(%arg0: i32) -> (i32, i32) {
    %c0_i32 = arith.constant 0 : i32
    %c0_i32_0 = arith.constant 0 : i32
    %c0_i32_1 = arith.constant 0 : i32
    return %c0_i32, %c0_i32_0 : i32, i32
  }
  func.func @transform_2(%arg0: i32) -> (i32, i32) {
    %c0_i32 = arith.constant 0 : i32
    %c0_i32_0 = arith.constant 0 : i32
    %c0_i32_1 = arith.constant 0 : i32
    return %c0_i32, %c0_i32_0 : i32, i32
  }
  func.func @transform_3(%arg0: i32) -> (i32, i32) {
    %c0_i32 = arith.constant 0 : i32
    %c0_i32_0 = arith.constant 0 : i32
    %c0_i32_1 = arith.constant 0 : i32
    return %c0_i32, %c0_i32_0 : i32, i32
  }
  func.func @transform_4(%arg0: i32) -> (i32, i32) {
    %c0_i32 = arith.constant 0 : i32
    %c0_i32_0 = arith.constant 0 : i32
    return %arg0, %c0_i32 : i32, i32
  }
}

</mosaic_0001>

<bundles_post_ra>
// kernel: pre_norm_forward.2
= control target key start
LH: loop header
LB: loop body
LE: loop exit
PB: predicated region body
PF: predicated region fallthrough
CT: control target
= control target key end

     0   :  { %v499_v0 = vmov 0.0|0.0   ;;  %vm500_vm0 = vmmov 0   ;;  %v501_v4 = vmov 0.0   ;;  %s638_s1 = inlined_call_operand.vmem [shape: f32[128,128], index: 1, kind: input, shape index: {}]   ;;  %s639_s0 = inlined_call_operand.vmem [shape: f32[8,128], index: 0, kind: input, shape index: {}]   ;;  %s640_s2 = inlined_call_operand.vmem [shape: bf16[128,128], index: 2, kind: input, shape index: {}]   ;;  %s641_s3 = inlined_call_operand.vmem [shape: f32[1,128], index: 3, kind: input, shape index: {}]   ;;  %s642_s4 = inlined_call_operand.vmem [shape: f32[8,128], index: 4, kind: output, shape index: {}]  }
   0x1   :  { %438 = vmatprep.subr.bf16.mxu1 %v499_v0  ;;  %v19_v1 = vld [vmem:[%s638_s1] sm:$0xff]  ;;  %v20_v2 = vld [vmem:[%s638_s1 + $0x8] sm:$0xff]  ;;  %v21_v3 = vld [vmem:[%s638_s1 + $0x10] sm:$0xff]  ;;  %380 = vmatprep.mubr.msk.f32.mxu1 %vm500_vm0, %v501_v4 }
   0x2   :  { %v439_v5 = vpack.c.bf16 %v20_v2, %v19_v1  ;;  %v22_v6 = vld [vmem:[%s638_s1 + $0x18] sm:$0xff]  ;;  %418 = vmatprep.subr.bf16.mxu0 %v501_v4  ;;  %434 = vmatprep.mubr.msk.bf16.mxu0 %vm500_vm0, %v501_v4  ;;  %v23_v8 = vld [vmem:[%s638_s1 + $0x20] sm:$0xff]  ;;  %v24_v9 = vld [vmem:[%s638_s1 + $0x28] sm:$0xff] }
   0x3   :  { %v442_v7 = vpack.c.bf16 %v22_v6, %v21_v3  ;;  %v445_v10 = vpack.c.bf16 %v24_v9, %v23_v8  ;;  %v25_v11 = vld [vmem:[%s638_s1 + $0x30] sm:$0xff]  ;;  %v26_v12 = vld [vmem:[%s638_s1 + $0x38] sm:$0xff]  ;;  %v27_v14 = vld [vmem:[%s638_s1 + $0x40] sm:$0xff] }
   0x4   :  { %440 = vmatpush3.bf16.msra.mxu1 %v439_v5  ;;  %v448_v13 = vpack.c.bf16 %v26_v12, %v25_v11  ;;  %v28_v15 = vld [vmem:[%s638_s1 + $0x48] sm:$0xff]  ;;  %v29_v17 = vld [vmem:[%s638_s1 + $0x50] sm:$0xff]  ;;  %v30_v18 = vld [vmem:[%s638_s1 + $0x58] sm:$0xff] }
   0x5   :  { %441 = vmatprep.subr.bf16.mxu1 %v499_v0  ;;  %v451_v16 = vpack.c.bf16 %v28_v15, %v27_v14  ;;  %v454_v19 = vpack.c.bf16 %v30_v18, %v29_v17  ;;  %v31_v20 = vld [vmem:[%s638_s1 + $0x60] sm:$0xff]  ;;  %v32_v21 = vld [vmem:[%s638_s1 + $0x68] sm:$0xff]  ;;  %v33_v23 = vld [vmem:[%s638_s1 + $0x70] sm:$0xff] }
   0x6   :  { %v457_v22 = vpack.c.bf16 %v32_v21, %v31_v20  ;;  %v34_v24 = vld [vmem:[%s638_s1 + $0x78] sm:$0xff]  ;;  %v18_v26 = vld [vmem:[%s639_s0] sm:$0xff]  ;;  %v490_v28 = vld [vmem:[%s640_s2 + $0x8] sm:$0xff]  }
   0x7   :  { %v460_v25 = vpack.c.bf16 %v34_v24, %v33_v23  ;;  %v489_v27 = vld [vmem:[%s640_s2] sm:$0xff]   ;;  %v491_v29 = vld [vmem:[%s640_s2 + $0x10] sm:$0xff]   ;;  %v492_v30 = vld [vmem:[%s640_s2 + $0x18] sm:$0xff]  }
   0x8   :  { %443 = vmatpush3.bf16.msra.mxu1 %v442_v7  ;;  %419 = vmatpush3.bf16.msra.mxu0 %v489_v27  ;;  %v493_v35 = vld [vmem:[%s640_s2 + $0x20] sm:$0xff]   ;;  %v494_v36 = vld [vmem:[%s640_s2 + $0x28] sm:$0xff]   ;;  %v495_v37 = vld [vmem:[%s640_s2 + $0x30] sm:$0xff]  }
   0x9   :  { %444 = vmatprep.subr.bf16.mxu1 %v499_v0  ;;  %420 = vmatprep.subr.bf16.mxu0 %v501_v4  ;;  %v496_v38 = vld [vmem:[%s640_s2 + $0x38] sm:$0xff]   ;;  %v296_v45 = vld [vmem:[%s641_s3] ss:$0 sm:$0xff] }
   0xc   :  { %446 = vmatpush3.bf16.msra.mxu1 %v445_v10  ;;  %421 = vmatpush3.bf16.msra.mxu0 %v490_v28 }
   0xd   :  { %447 = vmatprep.subr.bf16.mxu1 %v499_v0  ;;  %422 = vmatprep.subr.bf16.mxu0 %v501_v4 }
  0x10   :  { %449 = vmatpush3.bf16.msra.mxu1 %v448_v13  ;;  %423 = vmatpush3.bf16.msra.mxu0 %v491_v29 }
  0x11   :  { %450 = vmatprep.subr.bf16.mxu1 %v499_v0  ;;  %424 = vmatprep.subr.bf16.mxu0 %v501_v4 }
  0x14   :  { %452 = vmatpush3.bf16.msra.mxu1 %v451_v16  ;;  %425 = vmatpush3.bf16.msra.mxu0 %v492_v30 }
  0x15   :  { %453 = vmatprep.subr.bf16.mxu1 %v499_v0  ;;  %426 = vmatprep.subr.bf16.mxu0 %v501_v4 }
  0x18   :  { %455 = vmatpush3.bf16.msra.mxu1 %v454_v19  ;;  %427 = vmatpush3.bf16.msra.mxu0 %v493_v35 }
  0x19   :  { %456 = vmatprep.subr.bf16.mxu1 %v499_v0  ;;  %428 = vmatprep.subr.bf16.mxu0 %v501_v4 }
  0x1c   :  { %458 = vmatpush3.bf16.msra.mxu1 %v457_v22  ;;  %429 = vmatpush3.bf16.msra.mxu0 %v494_v36 }
  0x1d   :  { %459 = vmatprep.subr.bf16.mxu1 %v499_v0  ;;  %430 = vmatprep.subr.bf16.mxu0 %v501_v4 }
  0x20   :  { %461 = vmatpush3.bf16.msra.mxu1 %v460_v25  ;;  %431 = vmatpush3.bf16.msra.mxu0 %v495_v37 }
  0x21   :  { %462 = vmatprep.subr.bf16.mxu1 %v499_v0  ;;  %432 = vmatprep.subr.bf16.mxu0 %v501_v4 }
  0x23   :  { %381 = vmatmul.mubr.f32.vlgmr.msra.gmra.mrb[0].mxu1 %v18_v26 }
  0x24   :  { %464 = vmatpush3.bf16.msra.mxu1 %v439_v5  ;;  %415 = vmatprep.mubr.msk.f32.mxu1 %vm500_vm0, %v501_v4 }
  0x25   :  { %465 = vmatprep.subr.bf16.mxu1 %v499_v0  ;;  %433 = vmatpush3.bf16.msra.mxu0 %v496_v38 }
  0x28   :  { %467 = vmatpush3.bf16.msra.mxu1 %v442_v7 }
  0x29   :  { %468 = vmatprep.subr.bf16.mxu1 %v499_v0 }
  0x2c   :  { %470 = vmatpush3.bf16.msra.mxu1 %v445_v10 }
  0x2d   :  { %471 = vmatprep.subr.bf16.mxu1 %v499_v0 }
  0x30   :  { %473 = vmatpush3.bf16.msra.mxu1 %v448_v13 }
  0x31   :  { %474 = vmatprep.subr.bf16.mxu1 %v499_v0 }
  0x34   :  { %476 = vmatpush3.bf16.msra.mxu1 %v451_v16 }
  0x35   :  { %477 = vmatprep.subr.bf16.mxu1 %v499_v0 }
  0x38   :  { %479 = vmatpush3.bf16.msra.mxu1 %v454_v19 }
  0x39   :  { %480 = vmatprep.subr.bf16.mxu1 %v499_v0 }
  0x3c   :  { %482 = vmatpush3.bf16.msra.mxu1 %v457_v22 }
  0x3d   :  { %483 = vmatprep.subr.bf16.mxu1 %v499_v0 }
  0x40   :  { %485 = vmatpush3.bf16.msra.mxu1 %v460_v25 }
  0xf6   :  { %v101_v31 = vpop.f32.mrb[0].mxu1 }
  0xf7   :  { %v105_v32 = vsub.f32 %v18_v26, %v101_v31  ;;  %v382_v33 = vpop.f32.mrb[1].mxu1 }
  0xf9   :  { %v106_v34 = vmul.f32 %v105_v32, %v105_v32 }
  0xfb   :  { %416 = vmatmul.mubr.f32.vlgmr.msra.gmra.mrb[2].mxu1 %v106_v34 }
 0x1ce   :  { %v173_v39 = vpop.f32.mrb[2].mxu1 }
 0x1cf   :  { %v174_v40 = vadd.f32 1e-05, %v173_v39  ;;  %v417_v41 = vpop.f32.mrb[3].mxu1 }
 0x1d1   :  { %497 = vrsqrt.f32 %v174_v40 }
 0x1db   :  { %v498_v42 = vpop.eup %497 }
 0x1dc   :  { %v178_v43 = vmul.f32 %v498_v42, %v105_v32 }
 0x1de   :  { %v179_v44 = vpack.c.bf16 %v178_v43, %v178_v43 }
 0x1e0   :  { %435 = vmatmul.mubr.bf16.vlgmr.msra.gmra.mrb[0].mxu0 %v179_v44 }
 0x2b3   :  { %v285_v46 = vpop.f32.mrb[0].mxu0 }
 0x2b4   :  { %v286_v47 = vadd.f32 %v296_v45, %v285_v46  ;;  %v436_v48 = vpop.f32.mrb[1].mxu0 }
 0x2b5   :  { %v288_v49 = vpop.f32.mrb[2].mxu0 }
 0x2b6   :  { %291 = vst [vmem:[%s642_s4] sm:$0xff] %v286_v47  ;;  %v437_v50 = vpop.f32.mrb[3].mxu0 }

// kernel: pre_norm_forward.3
= control target key start
LH: loop header
LB: loop body
LE: loop exit
PB: predicated region body
PF: predicated region fallthrough
CT: control target
= control target key end

     0   :  { %v358_v0 = vmov 0.0|0.0   ;;  %vm359_vm0 = vmmov 0   ;;  %v360_v4 = vmov 0.0   ;;  %s446_s3 = inlined_call_operand.vmem [shape: f32[128,128], index: 3, kind: input, shape index: {}]   ;;  %s447_s0 = inlined_call_operand.vmem [shape: f32[8,128], index: 0, kind: input, shape index: {}]   ;;  %s448_s1 = inlined_call_operand.vmem [shape: f32[1,128], index: 1, kind: input, shape index: {}]   ;;  %s449_s2 = inlined_call_operand.vmem [shape: f32[1,128], index: 2, kind: input, shape index: {}]   ;;  %s450_s4 = inlined_call_operand.vmem [shape: f32[8,128], index: 4, kind: output, shape index: {}]  }
   0x1   :  { %305 = vmatprep.subr.bf16.mxu0 %v358_v0  ;;  %v18_v1 = vld [vmem:[%s446_s3] sm:$0xff]  ;;  %v19_v2 = vld [vmem:[%s446_s3 + $0x8] sm:$0xff]  ;;  %v20_v3 = vld [vmem:[%s446_s3 + $0x10] sm:$0xff]  ;;  %267 = vmatprep.mubr.msk.f32.mxu0 %vm359_vm0, %v360_v4 }
   0x2   :  { %v306_v5 = vpack.c.bf16 %v19_v2, %v18_v1  ;;  %v21_v6 = vld [vmem:[%s446_s3 + $0x18] sm:$0xff]  ;;  %329 = vmatprep.subr.bf16.mxu1 %v358_v0  ;;  %302 = vmatprep.mubr.msk.f32.mxu1 %vm359_vm0, %v360_v4  ;;  %v22_v8 = vld [vmem:[%s446_s3 + $0x20] sm:$0xff]  ;;  %v23_v9 = vld [vmem:[%s446_s3 + $0x28] sm:$0xff] }
   0x3   :  { %v309_v7 = vpack.c.bf16 %v21_v6, %v20_v3  ;;  %v312_v10 = vpack.c.bf16 %v23_v9, %v22_v8  ;;  %v24_v11 = vld [vmem:[%s446_s3 + $0x30] sm:$0xff]  ;;  %v25_v12 = vld [vmem:[%s446_s3 + $0x38] sm:$0xff]  ;;  %v26_v14 = vld [vmem:[%s446_s3 + $0x40] sm:$0xff] }
   0x4   :  { %307 = vmatpush3.bf16.msra.mxu0 %v306_v5  ;;  %331 = vmatpush3.bf16.msra.mxu1 %v306_v5  ;;  %v315_v13 = vpack.c.bf16 %v25_v12, %v24_v11  ;;  %v27_v15 = vld [vmem:[%s446_s3 + $0x48] sm:$0xff]  ;;  %v28_v17 = vld [vmem:[%s446_s3 + $0x50] sm:$0xff]  ;;  %v29_v18 = vld [vmem:[%s446_s3 + $0x58] sm:$0xff] }
   0x5   :  { %308 = vmatprep.subr.bf16.mxu0 %v358_v0  ;;  %332 = vmatprep.subr.bf16.mxu1 %v358_v0  ;;  %v318_v16 = vpack.c.bf16 %v27_v15, %v26_v14  ;;  %v321_v19 = vpack.c.bf16 %v29_v18, %v28_v17  ;;  %v30_v20 = vld [vmem:[%s446_s3 + $0x60] sm:$0xff]  ;;  %v31_v21 = vld [vmem:[%s446_s3 + $0x68] sm:$0xff]  ;;  %v32_v23 = vld [vmem:[%s446_s3 + $0x70] sm:$0xff] }
   0x6   :  { %v324_v22 = vpack.c.bf16 %v31_v21, %v30_v20  ;;  %v33_v24 = vld [vmem:[%s446_s3 + $0x78] sm:$0xff]  ;;  %v17_v26 = vld [vmem:[%s447_s0] sm:$0xff] }
   0x7   :  { %v327_v25 = vpack.c.bf16 %v33_v24, %v32_v23  ;;  %v199_v35 = vld [vmem:[%s448_s1] ss:$0 sm:$0xff] }
   0x8   :  { %310 = vmatpush3.bf16.msra.mxu0 %v309_v7  ;;  %334 = vmatpush3.bf16.msra.mxu1 %v309_v7  ;;  %v200_v37 = vld [vmem:[%s449_s2] ss:$0 sm:$0xff] }
   0x9   :  { %311 = vmatprep.subr.bf16.mxu0 %v358_v0  ;;  %335 = vmatprep.subr.bf16.mxu1 %v358_v0 }
   0xc   :  { %313 = vmatpush3.bf16.msra.mxu0 %v312_v10  ;;  %337 = vmatpush3.bf16.msra.mxu1 %v312_v10 }
   0xd   :  { %314 = vmatprep.subr.bf16.mxu0 %v358_v0  ;;  %338 = vmatprep.subr.bf16.mxu1 %v358_v0 }
  0x10   :  { %316 = vmatpush3.bf16.msra.mxu0 %v315_v13  ;;  %340 = vmatpush3.bf16.msra.mxu1 %v315_v13 }
  0x11   :  { %317 = vmatprep.subr.bf16.mxu0 %v358_v0  ;;  %341 = vmatprep.subr.bf16.mxu1 %v358_v0 }
  0x14   :  { %319 = vmatpush3.bf16.msra.mxu0 %v318_v16  ;;  %343 = vmatpush3.bf16.msra.mxu1 %v318_v16 }
  0x15   :  { %320 = vmatprep.subr.bf16.mxu0 %v358_v0  ;;  %344 = vmatprep.subr.bf16.mxu1 %v358_v0 }
  0x18   :  { %322 = vmatpush3.bf16.msra.mxu0 %v321_v19  ;;  %346 = vmatpush3.bf16.msra.mxu1 %v321_v19 }
  0x19   :  { %323 = vmatprep.subr.bf16.mxu0 %v358_v0  ;;  %347 = vmatprep.subr.bf16.mxu1 %v358_v0 }
  0x1c   :  { %325 = vmatpush3.bf16.msra.mxu0 %v324_v22  ;;  %349 = vmatpush3.bf16.msra.mxu1 %v324_v22 }
  0x1d   :  { %326 = vmatprep.subr.bf16.mxu0 %v358_v0  ;;  %350 = vmatprep.subr.bf16.mxu1 %v358_v0 }
  0x20   :  { %328 = vmatpush3.bf16.msra.mxu0 %v327_v25  ;;  %352 = vmatpush3.bf16.msra.mxu1 %v327_v25 }
  0x23   :  { %268 = vmatmul.mubr.f32.vlgmr.msra.gmra.mrb[0].mxu0 %v17_v26 }
  0xf6   :  { %v100_v27 = vpop.f32.mrb[0].mxu0 }
  0xf7   :  { %v104_v28 = vsub.f32 %v17_v26, %v100_v27  ;;  %v269_v29 = vpop.f32.mrb[1].mxu0 }
  0xf9   :  { %v105_v30 = vmul.f32 %v104_v28, %v104_v28 }
  0xfb   :  { %303 = vmatmul.mubr.f32.vlgmr.msra.gmra.mrb[0].mxu1 %v105_v30 }
 0x1ce   :  { %v172_v31 = vpop.f32.mrb[0].mxu1 }
 0x1cf   :  { %v173_v32 = vadd.f32 1e-05, %v172_v31  ;;  %v304_v33 = vpop.f32.mrb[1].mxu1 }
 0x1d1   :  { %356 = vrsqrt.f32 %v173_v32 }
 0x1db   :  { %v357_v34 = vpop.eup %356 }
 0x1dc   :  { %v177_v36 = vmul.f32 %v357_v34, %v104_v28 }
 0x1de   :  { %v185_v38 = vmul.f32 %v199_v35, %v177_v36 }
 0x1e0   :  { %v193_v39 = vadd.f32 %v200_v37, %v185_v38 }
 0x1e2   :  { %194 = vst [vmem:[%s450_s4] sm:$0xff] %v193_v39 }

</bundles_post_ra>
